<compile_context>
chip_gen: v5e
topology: v5e:2x2
jax: 0.10.0
libtpu: 0.0.40
codegen_flags: <defaults>
</compile_context>

<pallas_src>
from functools import partial

import jax
import jax.numpy as jnp
from jax.experimental import pallas as pl
from jax.experimental.pallas import tpu as pltpu


def _round_up(n, m):
    return ((n + m - 1) // m) * m


def _pick_token_tiling(num_tokens):
    """Return (tile_rows, padded_tokens) for the token axis (numPatches + 1)."""
    for cand in (512, 256, 128):
        if num_tokens % cand == 0:
            return cand, num_tokens
    if num_tokens <= 512:
        # Single tile; pad rows to a sublane multiple (8).
        padded = _round_up(num_tokens, 8)
        return padded, padded
    # Large, awkward token counts: pad to a multiple of 256 and tile at 256.
    padded = _round_up(num_tokens, 256)
    return 256, padded


def _embed_kernel(tok_ref, w_ref, pos_ref, out_ref):
    # tok_ref: (1, TP, K_pad)  bf16   (row 0 of token 0 is zeros -> cls slot)
    # w_ref:   (K_pad, D_pad)  bf16   (grid-invariant)
    # pos_ref: (TP, D_pad)     f32    (cls+pos[0] on row 0, pos[1:]+bias after)
    # out_ref: (1, TP, D_pad)  f32
    acc = jnp.dot(tok_ref[0], w_ref[...],
                  preferred_element_type=jnp.float32)            # MXU
    out_ref[0, :, :] = (acc + pos_ref[...]).astype(out_ref.dtype)  # one aligned store


@partial(jax.jit, static_argnames=("patch_size",))
def patch_and_positional_embedding(x, conv_w, conv_b, cls_emb, pos_emb, *, patch_size):
    """x: (B, C, H, W) NCHW.  Returns (B, numPatches + 1, outChannels) float32."""
    B, C, H, W = x.shape
    assert H % patch_size == 0 and W % patch_size == 0, \
        "Input size must be div by patchSize"
    Hp, Wp = H // patch_size, W // patch_size
    P = Hp * Wp
    T = P + 1                      # tokens incl. class token
    D = conv_w.shape[0]
    K = C * patch_size * patch_size

    K_pad = _round_up(K, 128)
    D_pad = _round_up(D, 128)
    TP, T_pad = _pick_token_tiling(T)
    nt = T_pad // TP

    # --- im2col glue (same jit): cast to bf16 FIRST to halve the pass traffic.
    xb = x.astype(jnp.bfloat16)
    patches = xb.reshape(B, C, Hp, patch_size, Wp, patch_size)
    patches = patches.transpose(0, 2, 4, 1, 3, 5).reshape(B, P, K)   # (c, ph, pw) feats
    # Prepend a zero row (class-token slot) and pad token/K axes to tile sizes.
    tokens = jnp.pad(patches, ((0, 0), (1, T_pad - T + 1), (0, K_pad - K)))

    # conv weight (D, C, pS, pS) -> matmul weight (K, D), bf16, zero-padded.
    w_mat = conv_w.reshape(D, K).T.astype(jnp.bfloat16)
    w_mat = jnp.pad(w_mat, ((0, K_pad - K), (0, D_pad - D)))

    # Parameter-only folds (once, outside the hot loop): row 0 = cls + pos[0],
    # rows 1..P = pos[1:] + conv bias, padded rows = 0.
    pos = pos_emb.reshape(T, D).astype(jnp.float32)
    row0 = cls_emb.reshape(1, D).astype(jnp.float32) + pos[:1, :]
    rows = pos[1:, :] + conv_b.reshape(1, D).astype(jnp.float32)
    pos_full = jnp.concatenate([row0, rows], axis=0)                 # (T, D)
    pos_full = jnp.pad(pos_full, ((0, T_pad - T), (0, D_pad - D)))   # (T_pad, D_pad)

    # VMEM budget (double-buffered worst case), kept under v7x's 64 MiB.
    vmem_need = (2 * TP * K_pad * 2 + 2 * K_pad * D_pad * 2
                 + 2 * TP * D_pad * 4 + 2 * TP * D_pad * 4)
    vmem_limit = int(min(max(2 * vmem_need, 32 * 1024 * 1024), 60 * 1024 * 1024))

    cost = pl.CostEstimate(
        flops=2 * B * T_pad * K_pad * D_pad,
        transcendentals=0,
        bytes_accessed=(B * T_pad * K_pad * 2      # tokens (bf16)
                        + K_pad * D_pad * 2        # weight (bf16, fetched once)
                        + B * T_pad * D_pad * 4    # pos/bias table reads
                        + B * T_pad * D_pad * 4))  # output writes

    out_pad = pl.pallas_call(
        _embed_kernel,
        out_shape=jax.ShapeDtypeStruct((B, T_pad, D_pad), jnp.float32),
        grid_spec=pltpu.PrefetchScalarGridSpec(
            num_scalar_prefetch=0,
            grid=(B, nt),
            in_specs=[
                pl.BlockSpec((1, TP, K_pad), lambda b, t: (b, t, 0)),
                pl.BlockSpec((K_pad, D_pad), lambda b, t: (0, 0)),   # grid-invariant
                pl.BlockSpec((TP, D_pad), lambda b, t: (t, 0)),
            ],
            out_specs=pl.BlockSpec((1, TP, D_pad), lambda b, t: (b, t, 0)),
        ),
        compiler_params=pltpu.CompilerParams(
            dimension_semantics=("parallel", "parallel"),
            vmem_limit_bytes=vmem_limit),
        cost_estimate=cost,
    )(tokens, w_mat, pos_full)

    # Un-pad (glue inside the same jit).
    return out_pad[:, :T, :D]


def _reference(x, conv_w, conv_b, cls_emb, pos_emb, patch_size):
    # pure-JAX float32 reference (lax conv) for sanity checking
    y = jax.lax.conv_general_dilated(
        x, conv_w, window_strides=(patch_size, patch_size), padding="VALID",
        dimension_numbers=("NCHW", "OIHW", "NCHW"))
    y = y + conv_b[None, :, None, None]
    B, D, Hp, Wp = y.shape
    y = y.reshape(B, D, Hp * Wp).transpose(0, 2, 1)              # (B, P, D)
    cls_tok = jnp.broadcast_to(cls_emb, (B, 1, D))
    return jnp.concatenate([cls_tok, y], axis=1) + pos_emb


if __name__ == "__main__":
    # small deterministic config
    B, inC, imgSize, patchSize, outC = 2, 4, 16, 4, 32
    P = (imgSize // patchSize) ** 2

    key = jax.random.PRNGKey(0)
    kx, kw, kb, kc, kp = jax.random.split(key, 5)
    x = jax.random.normal(kx, (B, inC, imgSize, imgSize), dtype=jnp.float32)
    conv_w = jax.random.normal(kw, (outC, inC, patchSize, patchSize),
                               dtype=jnp.float32) * 0.05
    conv_b = jax.random.normal(kb, (outC,), dtype=jnp.float32) * 0.05
    cls_emb = jax.random.normal(kc, (1, 1, outC), dtype=jnp.float32)
    pos_emb = jax.random.normal(kp, (1, P + 1, outC), dtype=jnp.float32)

    out = patch_and_positional_embedding(x, conv_w, conv_b, cls_emb, pos_emb,
                                         patch_size=patchSize)
    out = jax.block_until_ready(out)

    ref = _reference(x, conv_w, conv_b, cls_emb, pos_emb, patchSize)
    assert out.shape == (B, P + 1, outC)
    # bf16 matmul inputs (f32 accumulate) -> loosened tolerance vs f32 reference
    assert jnp.allclose(out, ref, atol=3e-2, rtol=3e-2), \
        float(jnp.max(jnp.abs(out - ref)))
    print("KERNEL_OK")
</pallas_src>

<mosaic_0001>
module attributes {stable_mosaic.version = 11 : i64} {
  func.func @_embed_kernel(%arg0: i32, %arg1: i32, %arg2: memref<1x24x128xbf16, #tpu.memory_space<vmem>>, %arg3: memref<128x128xbf16, #tpu.memory_space<vmem>>, %arg4: memref<24x128xf32, #tpu.memory_space<vmem>>, %arg5: memref<1x24x128xf32, #tpu.memory_space<vmem>>) attributes {dimension_semantics = [#tpu.dimension_semantics<parallel>, #tpu.dimension_semantics<parallel>], iteration_bounds = array<i64: 2, 1>, scalar_prefetch = 0 : i64, scratch_operands = 0 : i64, tpu.core_type = #tpu.core_type<tc>, window_params = [{transform_indices = @transform_0, window_bounds = array<i64: 1, 24, 128>}, {pipeline_mode = #tpu.pipeline_mode<synchronous>, transform_indices = @transform_1, window_bounds = array<i64: 128, 128>}, {transform_indices = @transform_2, window_bounds = array<i64: 24, 128>}, {transform_indices = @transform_3, window_bounds = array<i64: 1, 24, 128>}]} {
    %c0 = arith.constant 0 : index
    %c0_0 = arith.constant 0 : index
    %c0_1 = arith.constant 0 : index
    %0 = vector.load %arg2[%c0, %c0_0, %c0_1] : memref<1x24x128xbf16, #tpu.memory_space<vmem>>, vector<1x24x128xbf16>
    %1 = vector.shape_cast %0 : vector<1x24x128xbf16> to vector<24x128xbf16>
    %c0_2 = arith.constant 0 : index
    %c0_3 = arith.constant 0 : index
    %2 = vector.load %arg3[%c0_2, %c0_3] : memref<128x128xbf16, #tpu.memory_space<vmem>>, vector<128x128xbf16>
    %cst = arith.constant dense<0.000000e+00> : vector<24x128xf32>
    %3 = tpu.matmul %1, %2, %cst {dimension_numbers = #tpu.dot_dimension_numbers<[1], [0], [0], [1], [0, 0, 1, 1], [], []>} : vector<24x128xbf16>, vector<128x128xbf16>, vector<24x128xf32> -> vector<24x128xf32>
    %c0_4 = arith.constant 0 : index
    %c0_5 = arith.constant 0 : index
    %4 = vector.load %arg4[%c0_4, %c0_5] : memref<24x128xf32, #tpu.memory_space<vmem>>, vector<24x128xf32>
    %5 = arith.addf %3, %4 : vector<24x128xf32>
    %c0_6 = arith.constant 0 : index
    %c0_7 = arith.constant 0 : index
    %c0_8 = arith.constant 0 : index
    %6 = vector.load %arg5[%c0_6, %c0_7, %c0_8] : memref<1x24x128xf32, #tpu.memory_space<vmem>>, vector<1x24x128xf32>
    %7 = vector.shape_cast %6 : vector<1x24x128xf32> to vector<24x128xf32>
    %8 = vector.shape_cast %5 : vector<24x128xf32> to vector<1x24x128xf32>
    tpu.vector_store %arg5[%c0_6, %c0_7, %c0_8], %8 {strides = array<i32>} : memref<1x24x128xf32, #tpu.memory_space<vmem>>, vector<1x24x128xf32>,
    return
  }
  func.func @transform_0(%arg0: i32, %arg1: i32) -> (i32, i32, i32) {
    %c0_i32 = arith.constant 0 : i32
    %c0_i32_0 = arith.constant 0 : i32
    return %arg0, %arg1, %c0_i32 : i32, i32, i32
  }
  func.func @transform_1(%arg0: i32, %arg1: i32) -> (i32, i32) {
    %c0_i32 = arith.constant 0 : i32
    %c0_i32_0 = arith.constant 0 : i32
    %c0_i32_1 = arith.constant 0 : i32
    return %c0_i32, %c0_i32_0 : i32, i32
  }
  func.func @transform_2(%arg0: i32, %arg1: i32) -> (i32, i32) {
    %c0_i32 = arith.constant 0 : i32
    %c0_i32_0 = arith.constant 0 : i32
    return %arg1, %c0_i32 : i32, i32
  }
  func.func @transform_3(%arg0: i32, %arg1: i32) -> (i32, i32, i32) {
    %c0_i32 = arith.constant 0 : i32
    %c0_i32_0 = arith.constant 0 : i32
    return %arg0, %arg1, %c0_i32 : i32, i32, i32
  }
}

</mosaic_0001>

<bundles_post_ra>
// kernel: patch_and_positional_embedding.1
= control target key start
LH: loop header
LB: loop body
LE: loop exit
PB: predicated region body
PF: predicated region fallthrough
CT: control target
= control target key end

     0   :  { %s589_s12 = smov 0   ;;  %s591_s13 = smov 0   ;;  %s655_s0 = inlined_call_operand.vmem [shape: bf16[2,25,128], index: 0, kind: input, shape index: {}]   ;;  %s656_s1 = inlined_call_operand.vmem [shape: bf16[128,128], index: 1, kind: input, shape index: {}]   ;;  %s657_s2 = inlined_call_operand.vmem [shape: f32[24,128], index: 2, kind: input, shape index: {}]   ;;  %s658_s3 = inlined_call_operand.vmem [shape: f32[2,24,128], index: 3, kind: output, shape index: {}]  }
   0x1   :  { %s593_s14 = smov 0  }
   0x2 LB: > { %s25_s15 = sadd.s32 1, %s563_s13  ;;  %p460_p0 = scmp.ge.s32.totalorder %s567_s14, 1  ;;  %s567_s14 = sphi %s593_s14, %s13_s14   ;;  %s563_s13 = sphi %s591_s13, %s660_s13   ;;  %s559_s12 = sphi %s589_s12, %s659_s12  }
   0x3   : > { %p27_p1 = scmp.ge.s32.totalorder %s25_s15, 2  ;;  %p177_p2 = scmp.lt.s32.totalorder %s567_s14, 3 }
   0x5   : > { %s662_s15 = smov (%p27_p1, %s25_s15), 0  ;;  %p178_p3 = pnand %p460_p0, %p177_p2 }
   0x6   : > { %p223_p4 = scmp.lt.s32.totalorder (!%p178_p3), %s559_s12, 1 }
   0x7   : > { %181 = sbr.rel (%p178_p3) target bundleno = 181 (0xb5), region = 32 }
   0xc   : > { %v511_v0 = vld [vmem:[%s656_s1 + $0x38] sm:$0xff]  ;;  %v510_v1 = vld [vmem:[%s656_s1 + $0x30] sm:$0xff]  ;;  %v509_v2 = vld [vmem:[%s656_s1 + $0x28] sm:$0xff]  ;;  %s664_s12 = smov (!%p223_p4, %s559_s12), 1 }
   0xd   : > { %332 = vmatpush.bf16.msra.mxu0 %v511_v0  ;;  %512 = vmatpush.bf16.msra.mxu1 %v511_v0  ;;  %v508_v3 = vld [vmem:[%s656_s1 + $0x20] sm:$0xff]  ;;  %v507_v4 = vld [vmem:[%s656_s1 + $0x18] sm:$0xff]  ;;  %s502_s26 = sshll.u32 %s664_s12, 4  ;;  %v506_v5 = vld [vmem:[%s656_s1 + $0x10] sm:$0xff]  ;;  %s520_s9 = smul.u32 24, %s664_s12 }
   0xe   : > { %s230_s4 = scalar_lea.vmem %s655_s0, %s502_s26  ;;  %v505_v6 = vld [vmem:[%s656_s1 + $0x8] sm:$0xff]  ;;  %v504_v9 = vld [vmem:[%s656_s1] sm:$0xff]  ;;  %v273_v13 = vld [vmem:[%s657_s2 + $0x10] sm:$0xff] }
   0xf   : > { %v254_v7 = vld [vmem:[%s230_s4 + $0x8] sm:$0xf]  ;;  %v503_v10 = vld [vmem:[%s230_s4] sm:$0xff]  ;;  %s250_s20 = scalar_lea.vmem %s658_s3, %s520_s9 }
  0x10   : > { %v279_v8 = vunpack.c.l.b16 %v254_v7  ;;  %v271_v12 = vld [vmem:[%s657_s2] sm:$0xff]  ;;  %v272_v18 = vld [vmem:[%s657_s2 + $0x8] sm:$0xff] }
  0x11   : > { %333 = vmatpush.bf16.msra.mxu0 %v510_v1  ;;  %513 = vmatpush.bf16.msra.mxu1 %v510_v1 }
  0x12   : > { %v281_v11 = vpack.c.b16 %v279_v8, %v279_v8 }
  0x15   : > { %334 = vmatpush.bf16.msra.mxu0 %v509_v2  ;;  %514 = vmatpush.bf16.msra.mxu1 %v509_v2 }
  0x19   : > { %335 = vmatpush.bf16.msra.mxu0 %v508_v3  ;;  %515 = vmatpush.bf16.msra.mxu1 %v508_v3 }
  0x1d   : > { %336 = vmatpush.bf16.msra.mxu0 %v507_v4  ;;  %516 = vmatpush.bf16.msra.mxu1 %v507_v4 }
  0x21   : > { %337 = vmatpush.bf16.msra.mxu0 %v506_v5  ;;  %517 = vmatpush.bf16.msra.mxu1 %v506_v5 }
  0x25   : > { %338 = vmatpush.bf16.msra.mxu0 %v505_v6  ;;  %518 = vmatpush.bf16.msra.mxu1 %v505_v6 }
  0x29   : > { %339 = vmatpush.bf16.msra.mxu0 %v504_v9  ;;  %519 = vmatpush.bf16.msra.mxu1 %v504_v9 }
  0x2c   : > { %340 = vmatmul.bf16.vlgmr.msra.gmra.mxu0 %v503_v10  ;;  %345 = vmatmul.bf16.vlgmr.msra.gmra.mxu1 %v281_v11 }
  0xa9   : > { %v341_v14 = vpop.f32.mrf.mxu0  ;;  %v346_v15 = vpop.f32.mrf.mxu1 }
  0xaa   : > { %v342_v16 = vadd.f32 %v341_v14, %v271_v12  ;;  %v347_v17 = vadd.f32 %v346_v15, %v273_v13 }
  0xac   : > { %350 = vst [vmem:[%s250_s20] sm:$0xff] %v342_v16 }
  0xad   : > { %352 = vst [vmem:[%s250_s20 + $0x10] sm:$0xff] %v347_v17 }
  0xb1   : > { %v343_v19 = vpop.f32.mrf.mxu0  ;;  %v348_v20 = vpop.f32.mrf.mxu1 }
  0xb2   : > { %v344_v21 = vadd.f32 %v343_v19, %v272_v18 }
  0xb4   : > { %351 = vst [vmem:[%s250_s20 + $0x8] sm:$0xff] %v344_v21 }
  0xb5 PF: > { %s13_s14 = sadd.s32 1, %s567_s14   ;;  %s659_s12 = smov %s563_s13 }
  0xb6   : > { %p10_p5 = scmp.ge.s32.totalorder %s13_s14, 4   ;;  %s660_s13 = smov %s662_s15 }
  0xb8   :  { %12 = sbr.rel (!%p10_p5) target bundleno = 2 (0x2), region = 65 }

</bundles_post_ra>
